<compile_context>
chip_gen: v6e
topology: v6e:2x2x1
jax: 0.10.0
libtpu: 0.0.40
codegen_flags: <defaults>
</compile_context>

<pallas_src>
import functools
import math

import jax
import jax.numpy as jnp
from jax import lax
from jax.experimental import pallas as pl
from jax.experimental.pallas import tpu as pltpu

NEG_MASK_VALUE = -10000.0  # matches torch masked_fill(mask == 0, -10000)


def _round_up(x, m):
    return ((x + m - 1) // m) * m


def _lane_view(stats, n):
    """Broadcast (Tq, 128) lane-replicated row stats against a (Tq, n) tile."""
    if n == 128:
        return stats
    if n % 128 == 0:
        return jnp.tile(stats, (1, n // 128))      # lane-replicated -> cheap
    if n < 128:
        return stats[:, :n]
    return stats[:, :1]                            # generic broadcast fallback


def _flash_body(q_ref, k_ref, v_ref, o_ref, q_sc, m_sc, l_sc, acc_sc, *,
                scale, causal, kv_len, mask_ref=None):
    i = pl.program_id(1)
    kv = pl.program_id(2)
    tq = q_sc.shape[0]
    tkv = k_ref.shape[1]
    head_dim = acc_sc.shape[-1]

    @pl.when(kv == 0)
    def _():
        m_sc[...] = jnp.full_like(m_sc, -jnp.inf)
        l_sc[...] = jnp.zeros_like(l_sc)
        acc_sc[...] = jnp.zeros_like(acc_sc)
        # Hoist q * 1/sqrt(d) out of the KV loop (Q block is resident across kv).
        q_sc[...] = (q_ref[0].astype(jnp.float32) * scale).astype(q_sc.dtype)

    def update():
        q = q_sc[...]                       # (Tq, D)  compute dtype
        k = k_ref[0]                        # (Tkv, D)
        v = v_ref[0]                        # (Tkv, D)
        # s = q @ k^T, contracting the LAST dim of both operands (no k.T
        # relayout); MXU accumulates in f32.
        s = lax.dot_general(q, k, (((1,), (1,)), ((), ())),
                            preferred_element_type=jnp.float32)   # (Tq, Tkv)
        if mask_ref is not None:
            s = jnp.where(mask_ref[0, 0] == 0, jnp.float32(NEG_MASK_VALUE), s)
        if causal:
            # In-kernel causal mask: nothing streamed from HBM.
            row = i * tq + lax.broadcasted_iota(jnp.int32, s.shape, 0)
            col = kv * tkv + lax.broadcasted_iota(jnp.int32, s.shape, 1)
            s = jnp.where(col <= row, s, jnp.float32(NEG_MASK_VALUE))
        if kv_len is not None:
            # KV sequence was padded up to a multiple of Tkv: mask the padding.
            col = kv * tkv + lax.broadcasted_iota(jnp.int32, s.shape, 1)
            s = jnp.where(col < kv_len, s, -jnp.inf)

        # --- online softmax update (stats lane-replicated at (Tq, 128)) ------
        m_prev = m_sc[...]
        l_prev = l_sc[...]
        m_curr = jnp.max(s, axis=-1, keepdims=True)        # (Tq, 1)
        m_next = jnp.maximum(m_prev, m_curr)               # (Tq, 128)
        alpha = jnp.exp(m_prev - m_next)                   # (Tq, 128)
        p = jnp.exp(s - _lane_view(m_next, tkv))           # (Tq, Tkv) f32
        l_sc[...] = alpha * l_prev + jnp.sum(p, axis=-1, keepdims=True)
        pv = jnp.dot(p.astype(v.dtype), v, preferred_element_type=jnp.float32)
        acc_sc[...] = _lane_view(alpha, head_dim) * acc_sc[...] + pv
        m_sc[...] = m_next

    if causal:
        # Skip fully-masked KV tiles entirely; the clamped kv index_map in the
        # wrapper also prevents any DMA for these steps.
        @pl.when(kv * tkv <= (i + 1) * tq - 1)
        def _():
            update()
    else:
        update()

    @pl.when(kv == pl.num_programs(2) - 1)
    def _():
        l = l_sc[...]
        inv_l = jnp.where(l == 0.0, jnp.float32(1.0), 1.0 / l)   # exact recip
        o_ref[0] = (acc_sc[...] * _lane_view(inv_l, head_dim)).astype(o_ref.dtype)


def _sdpa_kernel(q_ref, k_ref, v_ref, o_ref, q_sc, m_sc, l_sc, acc_sc, *,
                 scale, causal, kv_len):
    _flash_body(q_ref, k_ref, v_ref, o_ref, q_sc, m_sc, l_sc, acc_sc,
                scale=scale, causal=causal, kv_len=kv_len)


def _sdpa_masked_kernel(q_ref, k_ref, v_ref, mask_ref, o_ref,
                        q_sc, m_sc, l_sc, acc_sc, *, scale, kv_len):
    _flash_body(q_ref, k_ref, v_ref, o_ref, q_sc, m_sc, l_sc, acc_sc,
                scale=scale, causal=False, kv_len=kv_len, mask_ref=mask_ref)


def scaled_dot_product_attention(q, k, v, mask=None, *, causal=False,
                                 q_tile=512, kv_tile=512,
                                 compute_dtype=None, kv_buffer_count=2):
    """q, k, v: [B, H, S, D]. mask (optional): broadcastable to [B, H, S, S].

    `causal=True` uses an in-kernel generated causal mask (and skips
    fully-masked KV tiles); it is mutually exclusive with `mask`.
    `kv_buffer_count=3` is useful on v5e (lowest HBM bandwidth).
    """
    B, H, S, D = q.shape
    BH = B * H
    scale = 1.0 / math.sqrt(D)            # python float: no device op at trace
    has_mask = mask is not None
    if has_mask and causal:
        raise ValueError("pass either `mask` or `causal=True`, not both")

    out_dtype = q.dtype
    if compute_dtype is None:
        # MXU is native bf16 on v5e/v6e/v7x; f32 matmul is multi-pass.
        compute_dtype = jnp.bfloat16 if q.dtype == jnp.float32 else q.dtype
    cdtype = jnp.dtype(compute_dtype)

    # Lane/sublane-dense tiles: Tkv (lane dim of s/p, contraction dim of PV) is
    # always a multiple of 128; Tq respects the native sublane tile of the
    # narrowest dtype sharing it (int8 mask -> 32, bf16 -> 16, f32 -> 8).
    if has_mask:
        q_mult = 32
    elif cdtype == jnp.dtype(jnp.bfloat16):
        q_mult = 16
    else:
        q_mult = 8
    Tq = _round_up(min(q_tile, S), q_mult)
    Tkv = _round_up(min(kv_tile, S), 128)
    Sq = _round_up(S, Tq)
    Skv = _round_up(S, Tkv)
    n_q, n_kv = Sq // Tq, Skv // Tkv
    kv_len = S if Skv != S else None      # in-kernel padding mask only if padded

    def prep(x, s_pad, dtype):
        x = x.reshape(BH, S, D)
        if dtype is not None and x.dtype != dtype:
            x = x.astype(dtype)
        if s_pad != S:
            x = jnp.pad(x, ((0, 0), (0, s_pad - S), (0, 0)))
        return x

    # Q is fetched once per q-tile (resident across kv) -> keep input dtype.
    # K/V are streamed every kv step -> cast to the compute dtype (halves DMA
    # for f32 inputs).
    qf = prep(q, Sq, None)
    kf = prep(k, Skv, cdtype)
    vf = prep(v, Skv, cdtype)

    q_spec = pl.BlockSpec((1, Tq, D), lambda b, i, j: (b, i, 0))
    if causal:
        # Clamp the kv block index so skipped (fully-masked) steps re-use the
        # previously fetched block => no HBM traffic for them.
        def kv_index(b, i, j):
            return (b, jnp.minimum(j, ((i + 1) * Tq - 1) // Tkv), 0)
    else:
        def kv_index(b, i, j):
            return (b, j, 0)
    kv_kwargs = {}
    if kv_buffer_count != 2:              # deeper buffering (v5e HBM BW)
        kv_kwargs = dict(pipeline_mode=pl.Buffered(kv_buffer_count))
    kv_spec = pl.BlockSpec((1, Tkv, D), kv_index, **kv_kwargs)
    out_spec = pl.BlockSpec((1, Tq, D), lambda b, i, j: (b, i, 0))
    out_shape = jax.ShapeDtypeStruct((BH, Sq, D), out_dtype)

    scratch = [pltpu.VMEM((Tq, D), cdtype),          # q * scale (hoisted)
               pltpu.VMEM((Tq, 128), jnp.float32),   # m (lane-replicated)
               pltpu.VMEM((Tq, 128), jnp.float32),   # l (lane-replicated)
               pltpu.VMEM((Tq, D), jnp.float32)]     # acc

    in_specs = [q_spec, kv_spec, kv_spec]
    operands = [qf, kf, vf]
    kernel = functools.partial(_sdpa_kernel, scale=scale, causal=causal,
                               kv_len=kv_len)
    mask_bytes = 0

    if has_mask:
        m4 = jnp.asarray(mask)
        m4 = m4.reshape((1,) * (4 - m4.ndim) + m4.shape)
        Mb, Mh, Mq, Mk = m4.shape
        if Mb not in (1, B) or Mh not in (1, H) or Mq not in (1, S) or Mk not in (1, S):
            raise ValueError(f"mask shape {jnp.shape(mask)} not broadcastable "
                             f"to {(B, H, S, S)}")
        # int8 (4x less DMA than int32); expand the q/k dims fully so the
        # streamed block is lane/sublane-dense (no 1-sublane int8 blocks), keep
        # the batch/head broadcast (a shared mask is NOT expanded to B*H).
        m4 = jnp.broadcast_to(m4.astype(jnp.int8), (Mb, Mh, S, S))
        m4 = jnp.pad(m4, ((0, 0), (0, 0), (0, Sq - S), (0, Skv - S)))

        def mask_index(b, i, j):
            return (b // H if Mb == B else 0,
                    b % H if Mh == H else 0,
                    i, j)

        in_specs.append(pl.BlockSpec((1, 1, Tq, Tkv), mask_index))
        operands.append(m4)
        mask_bytes = Tq * Tkv
        kernel = functools.partial(_sdpa_masked_kernel, scale=scale, kv_len=kv_len)

    # VMEM budget: buffered in/out blocks + f32 scratch + headroom, capped at
    # 3/4 of this generation's physical VMEM (48 MiB on v7x, 96 MiB v5e/v6e).
    it = cdtype.itemsize
    out_it = jnp.dtype(out_dtype).itemsize
    per_step = (Tq * D * jnp.dtype(qf.dtype).itemsize
                + 2 * Tkv * D * it + Tq * D * out_it + mask_bytes)
    scratch_bytes = 2 * Tq * 128 * 4 + Tq * D * 4 + Tq * D * it
    try:
        vmem_cap = int(getattr(pltpu.get_tpu_info(), "vmem_capacity_bytes",
                               128 << 20))
    except Exception:
        vmem_cap = 64 << 20
    budget = max(kv_buffer_count, 2) * 2 * per_step + scratch_bytes + (8 << 20)
    vmem_limit = int(min(max(budget, 32 << 20), (vmem_cap * 3) // 4))

    out = pl.pallas_call(
        kernel,
        out_shape=out_shape,
        grid_spec=pltpu.PrefetchScalarGridSpec(
            num_scalar_prefetch=0,
            grid=(BH, n_q, n_kv),
            in_specs=in_specs,
            out_specs=out_spec,
            scratch_shapes=scratch,
        ),
        compiler_params=pltpu.CompilerParams(
            # On v7x (2 TCs) make sure BH * n_q >= 2 so both cores get work.
            dimension_semantics=("parallel", "parallel", "arbitrary"),
            vmem_limit_bytes=vmem_limit,
        ),
    )(*operands)

    if Sq != S:
        out = out[:, :S]
    return out.reshape(B, H, S, D)


def _reference_sdpa(q, k, v, mask=None):
    d_k = q.shape[-1]
    att = jnp.einsum("bhqd,bhkd->bhqk", q.astype(jnp.float32),
                     k.astype(jnp.float32)) / math.sqrt(d_k)
    if mask is not None:
        att = jnp.where(mask == 0, NEG_MASK_VALUE, att)
    att = jax.nn.softmax(att, axis=-1)
    return jnp.einsum("bhqk,bhkd->bhqd", att,
                      v.astype(jnp.float32)).astype(q.dtype)


if __name__ == "__main__":
    # Small shapes consistent with the module: batch=2, heads=4, seq=8, hidden=32.
    B, H, S, D = 2, 4, 8, 32
    key = jax.random.PRNGKey(0)
    kq, kk, kv_, km = jax.random.split(key, 4)
    q = jax.random.normal(kq, (B, H, S, D), dtype=jnp.float32)
    k = jax.random.normal(kk, (B, H, S, D), dtype=jnp.float32)
    v = jax.random.normal(kv_, (B, H, S, D), dtype=jnp.float32)

    # 1) unmasked, exact f32 compute path (tight tolerance).
    out = scaled_dot_product_attention(q, k, v, compute_dtype=jnp.float32)
    jax.block_until_ready(out)
    assert out.shape == (B, H, S, D)
    ref = _reference_sdpa(q, k, v)
    assert jnp.allclose(out, ref, atol=2e-3, rtol=2e-3), "unmasked f32 mismatch"

    # 2) in-kernel causal mask (no mask tensor streamed from HBM).
    out_c = scaled_dot_product_attention(q, k, v, causal=True,
                                         compute_dtype=jnp.float32)
    jax.block_until_ready(out_c)
    causal_mask = jnp.tril(jnp.ones((S, S), dtype=jnp.int32))[None, None]
    ref_c = _reference_sdpa(q, k, v, mask=causal_mask)
    assert jnp.allclose(out_c, ref_c, atol=2e-3, rtol=2e-3), "causal f32 mismatch"

    # 3) arbitrary streamed mask (broadcast over heads), f32 compute.
    rand_mask = (jax.random.uniform(km, (B, 1, S, S)) > 0.3).astype(jnp.int32)
    out_m = scaled_dot_product_attention(q, k, v, mask=rand_mask,
                                         compute_dtype=jnp.float32)
    jax.block_until_ready(out_m)
    ref_m = _reference_sdpa(q, k, v, mask=rand_mask)
    assert jnp.allclose(out_m, ref_m, atol=2e-3, rtol=2e-3), "masked f32 mismatch"

    # 4) larger shape: multi-tile flash path + padded sequence (640 -> 1024)
    #    + causal tile skipping, validated exactly with f32 compute.
    B2, H2, S2, D2 = 1, 2, 640, 128
    k2q, k2k, k2v = jax.random.split(jax.random.PRNGKey(1), 3)
    q2 = jax.random.normal(k2q, (B2, H2, S2, D2), dtype=jnp.float32)
    k2 = jax.random.normal(k2k, (B2, H2, S2, D2), dtype=jnp.float32)
    v2 = jax.random.normal(k2v, (B2, H2, S2, D2), dtype=jnp.float32)
    causal2 = jnp.tril(jnp.ones((S2, S2), dtype=jnp.int32))[None, None]

    out4 = scaled_dot_product_attention(q2, k2, v2, causal=True,
                                        compute_dtype=jnp.float32)
    jax.block_until_ready(out4)
    ref4 = _reference_sdpa(q2, k2, v2, mask=causal2)
    assert jnp.allclose(out4, ref4, atol=2e-3, rtol=2e-3), "tiled causal f32 mismatch"

    # 5/6) default path: bf16 MXU operands (f32 accumulation). Tolerance is
    #      set by the bf16 quantization of q/k/v/p, not by the flash algorithm.
    out5 = scaled_dot_product_attention(q2, k2, v2)
    jax.block_until_ready(out5)
    ref5 = _reference_sdpa(q2, k2, v2)
    assert jnp.allclose(out5, ref5, atol=5e-2, rtol=5e-2), "bf16 unmasked mismatch"

    out6 = scaled_dot_product_attention(q2, k2, v2, causal=True)
    jax.block_until_ready(out6)
    assert jnp.allclose(out6, ref4, atol=5e-2, rtol=5e-2), "bf16 causal mismatch"

    print("KERNEL_OK")
</pallas_src>

<mosaic_0001>
module attributes {stable_mosaic.version = 11 : i64} {
  func.func @_sdpa_kernel(%arg0: i32, %arg1: i32, %arg2: i32, %arg3: memref<1x8x32xf32, #tpu.memory_space<vmem>>, %arg4: memref<1x128x32xf32, #tpu.memory_space<vmem>>, %arg5: memref<1x128x32xf32, #tpu.memory_space<vmem>>, %arg6: memref<1x8x32xf32, #tpu.memory_space<vmem>>, %arg7: memref<8x32xf32, #tpu.memory_space<vmem>>, %arg8: memref<8x128xf32, #tpu.memory_space<vmem>>, %arg9: memref<8x128xf32, #tpu.memory_space<vmem>>, %arg10: memref<8x32xf32, #tpu.memory_space<vmem>>) attributes {dimension_semantics = [#tpu.dimension_semantics<parallel>, #tpu.dimension_semantics<parallel>, #tpu.dimension_semantics<arbitrary>], iteration_bounds = array<i64: 8, 1, 1>, scalar_prefetch = 0 : i64, scratch_operands = 4 : i64, tpu.core_type = #tpu.core_type<tc>, window_params = [{transform_indices = @transform_0, window_bounds = array<i64: 1, 8, 32>}, {transform_indices = @transform_1, window_bounds = array<i64: 1, 128, 32>}, {transform_indices = @transform_2, window_bounds = array<i64: 1, 128, 32>}, {transform_indices = @transform_3, window_bounds = array<i64: 1, 8, 32>}]} {
    %c0_i32 = arith.constant 0 : i32
    %0 = arith.cmpi eq, %arg2, %c0_i32 : i32
    %1 = arith.extui %0 : i1 to i32
    %c0_i32_0 = arith.constant 0 : i32
    %2 = arith.cmpi ne, %1, %c0_i32_0 : i32
    scf.if %2 {
      %cst_26 = arith.constant 0xFF800000 : f32
      %43 = vector.broadcast %cst_26 : f32 to vector<8x128xf32>
      %c0_27 = arith.constant 0 : index
      %c0_28 = arith.constant 0 : index
      %44 = vector.load %arg8[%c0_27, %c0_28] : memref<8x128xf32, #tpu.memory_space<vmem>>, vector<8x128xf32>
      tpu.vector_store %arg8[%c0_27, %c0_28], %43 {strides = array<i32>} : memref<8x128xf32, #tpu.memory_space<vmem>>, vector<8x128xf32>,
      %cst_29 = arith.constant 0.000000e+00 : f32
      %45 = vector.broadcast %cst_29 : f32 to vector<8x128xf32>
      %c0_30 = arith.constant 0 : index
      %c0_31 = arith.constant 0 : index
      %46 = vector.load %arg9[%c0_30, %c0_31] : memref<8x128xf32, #tpu.memory_space<vmem>>, vector<8x128xf32>
      tpu.vector_store %arg9[%c0_30, %c0_31], %45 {strides = array<i32>} : memref<8x128xf32, #tpu.memory_space<vmem>>, vector<8x128xf32>,
      %cst_32 = arith.constant 0.000000e+00 : f32
      %47 = vector.broadcast %cst_32 : f32 to vector<8x32xf32>
      %c0_33 = arith.constant 0 : index
      %c0_34 = arith.constant 0 : index
      %48 = vector.load %arg10[%c0_33, %c0_34] : memref<8x32xf32, #tpu.memory_space<vmem>>, vector<8x32xf32>
      tpu.vector_store %arg10[%c0_33, %c0_34], %47 {strides = array<i32>} : memref<8x32xf32, #tpu.memory_space<vmem>>, vector<8x32xf32>,
      %c0_35 = arith.constant 0 : index
      %c0_36 = arith.constant 0 : index
      %c0_37 = arith.constant 0 : index
      %49 = vector.load %arg3[%c0_35, %c0_36, %c0_37] : memref<1x8x32xf32, #tpu.memory_space<vmem>>, vector<1x8x32xf32>
      %50 = vector.shape_cast %49 : vector<1x8x32xf32> to vector<8x32xf32>
      %cst_38 = arith.constant 0.176776692 : f32
      %51 = vector.broadcast %cst_38 : f32 to vector<8x32xf32>
      %52 = arith.mulf %50, %51 : vector<8x32xf32>
      %c0_39 = arith.constant 0 : index
      %c0_40 = arith.constant 0 : index
      %53 = vector.load %arg7[%c0_39, %c0_40] : memref<8x32xf32, #tpu.memory_space<vmem>>, vector<8x32xf32>
      tpu.vector_store %arg7[%c0_39, %c0_40], %52 {strides = array<i32>} : memref<8x32xf32, #tpu.memory_space<vmem>>, vector<8x32xf32>,
    } else {
    }
    %c0 = arith.constant 0 : index
    %c0_1 = arith.constant 0 : index
    %3 = vector.load %arg7[%c0, %c0_1] : memref<8x32xf32, #tpu.memory_space<vmem>>, vector<8x32xf32>
    %c0_2 = arith.constant 0 : index
    %c0_3 = arith.constant 0 : index
    %c0_4 = arith.constant 0 : index
    %4 = vector.load %arg4[%c0_2, %c0_3, %c0_4] : memref<1x128x32xf32, #tpu.memory_space<vmem>>, vector<1x128x32xf32>
    %5 = vector.shape_cast %4 : vector<1x128x32xf32> to vector<128x32xf32>
    %c0_5 = arith.constant 0 : index
    %c0_6 = arith.constant 0 : index
    %c0_7 = arith.constant 0 : index
    %6 = vector.load %arg5[%c0_5, %c0_6, %c0_7] : memref<1x128x32xf32, #tpu.memory_space<vmem>>, vector<1x128x32xf32>
    %7 = vector.shape_cast %6 : vector<1x128x32xf32> to vector<128x32xf32>
    %cst = arith.constant dense<0.000000e+00> : vector<8x128xf32>
    %8 = tpu.matmul %3, %5, %cst {dimension_numbers = #tpu.dot_dimension_numbers<[1], [1], [0], [0], [0, 0, 1, 0], [], []>} : vector<8x32xf32>, vector<128x32xf32>, vector<8x128xf32> -> vector<8x128xf32>
    %c128_i32 = arith.constant 128 : i32
    %9 = arith.muli %arg2, %c128_i32 : i32
    %10 = tpu.iota {dimensions = array<i32: 1>} : vector<8x128xi32>
    %11 = vector.broadcast %9 : i32 to vector<8x128xi32>
    %12 = arith.addi %11, %10 : vector<8x128xi32>
    %c8_i32 = arith.constant 8 : i32
    %13 = vector.broadcast %c8_i32 : i32 to vector<8x128xi32>
    %14 = arith.cmpi slt, %12, %13 : vector<8x128xi32>
    %cst_8 = arith.constant 0xFF800000 : f32
    %15 = vector.broadcast %cst_8 : f32 to vector<8x128xf32>
    %16 = arith.select %14, %8, %15 : vector<8x128xi1>, vector<8x128xf32>
    %c0_9 = arith.constant 0 : index
    %c0_10 = arith.constant 0 : index
    %17 = vector.load %arg8[%c0_9, %c0_10] : memref<8x128xf32, #tpu.memory_space<vmem>>, vector<8x128xf32>
    %c0_11 = arith.constant 0 : index
    %c0_12 = arith.constant 0 : index
    %18 = vector.load %arg9[%c0_11, %c0_12] : memref<8x128xf32, #tpu.memory_space<vmem>>, vector<8x128xf32>
    %cst_13 = arith.constant dense<0xFF800000> : vector<8xf32>
    %19 = vector.multi_reduction <maximumf>, %16, %cst_13 [1] : vector<8x128xf32> to vector<8xf32>
    %20 = vector.shape_cast %19 : vector<8xf32> to vector<8x1xf32>
    %21 = vector.broadcast %20 : vector<8x1xf32> to vector<8x128xf32>
    %22 = arith.maximumf %17, %21 : vector<8x128xf32>
    %23 = arith.subf %17, %22 : vector<8x128xf32>
    %24 = math.exp %23 : vector<8x128xf32>
    %25 = arith.subf %16, %22 : vector<8x128xf32>
    %26 = math.exp %25 : vector<8x128xf32>
    %27 = arith.mulf %24, %18 : vector<8x128xf32>
    %cst_14 = arith.constant dense<0.000000e+00> : vector<8xf32>
    %28 = vector.multi_reduction <add>, %26, %cst_14 [1] : vector<8x128xf32> to vector<8xf32>
    %29 = vector.shape_cast %28 : vector<8xf32> to vector<8x1xf32>
    %30 = vector.broadcast %29 : vector<8x1xf32> to vector<8x128xf32>
    %31 = arith.addf %27, %30 : vector<8x128xf32>
    %c0_15 = arith.constant 0 : index
    %c0_16 = arith.constant 0 : index
    %32 = vector.load %arg9[%c0_15, %c0_16] : memref<8x128xf32, #tpu.memory_space<vmem>>, vector<8x128xf32>
    tpu.vector_store %arg9[%c0_15, %c0_16], %31 {strides = array<i32>} : memref<8x128xf32, #tpu.memory_space<vmem>>, vector<8x128xf32>,
    %cst_17 = arith.constant dense<0.000000e+00> : vector<8x32xf32>
    %33 = tpu.matmul %26, %7, %cst_17 {dimension_numbers = #tpu.dot_dimension_numbers<[1], [0], [0], [1], [0, 0, 1, 1], [], []>} : vector<8x128xf32>, vector<128x32xf32>, vector<8x32xf32> -> vector<8x32xf32>
    %34 = vector.extract_strided_slice %24 {offsets = [0, 0], sizes = [8, 32], strides = [1, 1]} : vector<8x128xf32> to vector<8x32xf32>
    %c0_18 = arith.constant 0 : index
    %c0_19 = arith.constant 0 : index
    %35 = vector.load %arg10[%c0_18, %c0_19] : memref<8x32xf32, #tpu.memory_space<vmem>>, vector<8x32xf32>
    %36 = arith.mulf %34, %35 : vector<8x32xf32>
    %37 = arith.addf %36, %33 : vector<8x32xf32>
    %c0_20 = arith.constant 0 : index
    %c0_21 = arith.constant 0 : index
    %38 = vector.load %arg10[%c0_20, %c0_21] : memref<8x32xf32, #tpu.memory_space<vmem>>, vector<8x32xf32>
    tpu.vector_store %arg10[%c0_20, %c0_21], %37 {strides = array<i32>} : memref<8x32xf32, #tpu.memory_space<vmem>>, vector<8x32xf32>,
    %c0_22 = arith.constant 0 : index
    %c0_23 = arith.constant 0 : index
    %39 = vector.load %arg8[%c0_22, %c0_23] : memref<8x128xf32, #tpu.memory_space<vmem>>, vector<8x128xf32>
    tpu.vector_store %arg8[%c0_22, %c0_23], %22 {strides = array<i32>} : memref<8x128xf32, #tpu.memory_space<vmem>>, vector<8x128xf32>,
    %c0_i32_24 = arith.constant 0 : i32
    %40 = arith.cmpi eq, %arg2, %c0_i32_24 : i32
    %41 = arith.extui %40 : i1 to i32
    %c0_i32_25 = arith.constant 0 : i32
    %42 = arith.cmpi ne, %41, %c0_i32_25 : i32
    scf.if %42 {
      %c0_26 = arith.constant 0 : index
      %c0_27 = arith.constant 0 : index
      %43 = vector.load %arg9[%c0_26, %c0_27] : memref<8x128xf32, #tpu.memory_space<vmem>>, vector<8x128xf32>
      %cst_28 = arith.constant 0.000000e+00 : f32
      %44 = vector.broadcast %cst_28 : f32 to vector<8x128xf32>
      %45 = arith.cmpf oeq, %43, %44 : vector<8x128xf32>
      %cst_29 = arith.constant 1.000000e+00 : f32
      %46 = vector.broadcast %cst_29 : f32 to vector<8x128xf32>
      %47 = arith.divf %46, %43 : vector<8x128xf32>
      %cst_30 = arith.constant 1.000000e+00 : f32
      %48 = vector.broadcast %cst_30 : f32 to vector<8x128xf32>
      %49 = arith.select %45, %48, %47 : vector<8x128xi1>, vector<8x128xf32>
      %c0_31 = arith.constant 0 : index
      %c0_32 = arith.constant 0 : index
      %50 = vector.load %arg10[%c0_31, %c0_32] : memref<8x32xf32, #tpu.memory_space<vmem>>, vector<8x32xf32>
      %51 = vector.extract_strided_slice %49 {offsets = [0, 0], sizes = [8, 32], strides = [1, 1]} : vector<8x128xf32> to vector<8x32xf32>
      %52 = arith.mulf %50, %51 : vector<8x32xf32>
      %c0_33 = arith.constant 0 : index
      %c0_34 = arith.constant 0 : index
      %c0_35 = arith.constant 0 : index
      %53 = vector.load %arg6[%c0_33, %c0_34, %c0_35] : memref<1x8x32xf32, #tpu.memory_space<vmem>>, vector<1x8x32xf32>
      %54 = vector.shape_cast %53 : vector<1x8x32xf32> to vector<8x32xf32>
      %55 = vector.shape_cast %52 : vector<8x32xf32> to vector<1x8x32xf32>
      tpu.vector_store %arg6[%c0_33, %c0_34, %c0_35], %55 {strides = array<i32>} : memref<1x8x32xf32, #tpu.memory_space<vmem>>, vector<1x8x32xf32>,
    } else {
    }
    return
  }
  func.func @transform_0(%arg0: i32, %arg1: i32, %arg2: i32) -> (i32, i32, i32) {
    %c0_i32 = arith.constant 0 : i32
    %c0_i32_0 = arith.constant 0 : i32
    return %arg0, %arg1, %c0_i32 : i32, i32, i32
  }
  func.func @transform_1(%arg0: i32, %arg1: i32, %arg2: i32) -> (i32, i32, i32) {
    %c0_i32 = arith.constant 0 : i32
    %c0_i32_0 = arith.constant 0 : i32
    return %arg0, %arg2, %c0_i32 : i32, i32, i32
  }
  func.func @transform_2(%arg0: i32, %arg1: i32, %arg2: i32) -> (i32, i32, i32) {
    %c0_i32 = arith.constant 0 : i32
    %c0_i32_0 = arith.constant 0 : i32
    return %arg0, %arg2, %c0_i32 : i32, i32, i32
  }
  func.func @transform_3(%arg0: i32, %arg1: i32, %arg2: i32) -> (i32, i32, i32) {
    %c0_i32 = arith.constant 0 : i32
    %c0_i32_0 = arith.constant 0 : i32
    return %arg0, %arg1, %c0_i32 : i32, i32, i32
  }
}

</mosaic_0001>

<bundles_post_ra>
// kernel: tpu_custom_call.1
= control target key start
LH: loop header
LB: loop body
LE: loop exit
PB: predicated region body
PF: predicated region fallthrough
CT: control target
= control target key end

     0   :  { %8 = vsyncpa [#allocation7], 0  ;;  %s1177_s0 = inlined_call_operand.vmem [shape: f32[8,8,32], index: 0, kind: input, shape index: {}]   ;;  %s1178_s1 = inlined_call_operand.vmem [shape: f32[8,128,32], index: 1, kind: input, shape index: {}]   ;;  %s1179_s2 = inlined_call_operand.vmem [shape: f32[8,128,32], index: 2, kind: input, shape index: {}]   ;;  %s1180_s3 = inlined_call_operand.hbm [shape: f32[8,8,32], index: 3, kind: output, shape index: {}]  }
   0x1   :  { %10 = vsyncpa [#allocation7 + $0x1], 0  ;;  %s972_s12 = smov 0   ;;  %s974_s13 = smov 0  }
   0x2   :  { %s976_s14 = smov 0   ;;  %s978_s15 = smov 0  }
   0x3   :  { %s980_s16 = smov 0   ;;  %s982_s17 = smov 0  }
   0x4 LB: > { %s670_s18 = sadd.s32 4294967295, %s947_s17   ;;  %s671_s19 = sadd.s32 4294967294, %s947_s17   ;;  %s947_s17 = sphi %s982_s17, %s16_s17   ;;  %s943_s16 = sphi %s980_s16, %s1187_s16   ;;  %s939_s15 = sphi %s978_s15, %s1186_s15   ;;  %s935_s14 = sphi %s976_s14, %s1185_s14   ;;  %s931_s13 = sphi %s974_s13, %s1184_s13   ;;  %s927_s12 = sphi %s972_s12, %s1183_s12  }
   0x5   : > { %s35_s20 = sadd.s32 1, %s943_s16  ;;  %s128_s21 = sadd.s32 1, %s935_s14 }
   0x6   : > { %p37_p0 = scmp.ge.s32.totalorder %s35_s20, 8  ;;  %p138_p1 = scmp.ne.s32.totalorder %s935_s14, %s931_s13 }
   0x7   : > { %p139_p2 = scmp.eq.s32.totalorder %s670_s18, 7  ;;  %p144_p3 = scmp.ne.s32.totalorder %s931_s13, %s927_s12 }
   0x8   : > { %s1189_s20 = smov (%p37_p0, %s35_s20), 0  ;;  %p145_p5 = scmp.eq.s32.totalorder %s671_s19, 7 }
   0x9   : > { %p1012_p4 = por %p139_p2, %p138_p1  ;;  %s123_s23 = ssub.s32 %s943_s16, %s1189_s20 }
   0xa   : > { %p674_p6 = scmp.ge.s32.totalorder %s947_s17, 1  ;;  %p126_p7 = scmp.eq.s32.totalorder %s123_s23, 0 }
   0xb   : > { %p1019_p8 = por %p145_p5, %p144_p3  ;;  %p199_p9 = scmp.lt.s32.totalorder %s947_s17, 9 }
   0xc   : > { %s1025_s25 = scalar_select %p126_p7, %s935_s14, %s128_s21  }
   0xd   : > { %p200_p10 = pnand %p674_p6, %p199_p9 }
   0xe   : > { %p243_p11 = scmp.lt.s32.totalorder (!%p200_p10), %s939_s15, 7  ;;  %s240_s11 = sand.u32 (!%p200_p10), 1, %s931_s13  }
   0xf   : > { %203 = sbr.rel (%p200_p10) target bundleno = 656 (0x290), region = 32  ;;  %s675_s18 = sshll.u32 (!%p200_p10), %s240_s11, 3 }
  0x10   : > { %s699_s19 = sshll.u32 (!%p200_p10), %s939_s15, 7  ;;  %s242_s21 = scalar_lea.vmem (!%p200_p10), [#allocation6], %s675_s18 }
  0x11   : > { %s560_s23 = sshll.u32 (!%p200_p10), %s242_s21, 4  ;;  %s558_s28 = scalar_lea.hbm (!%p200_p10), %s1180_s3, %s699_s19  ;;  %s561_s23 = int_to_ptr.vmem [resolvable:$true] %s560_s23 }
  0x12   : > { %s546_s29 = scalar_lea.sflag (!%p200_p10), [#allocation7], %s240_s11 }
  0x14   : > { %vm276_vm0 = vcmask 261120   ;;  %v949_v0 = vmov 0.0   ;;  %vm950_vm1 = vmmov 0   ;;  %s1033_s26 = scalar_select %p243_p11, %s939_s15, 7  ;;  %v437_v27 = vlaneseq }
  0x15   : > { %738 = vmatprep.subr.mxu0 %v949_v0  ;;  %277 = vst.msk [vmem:[#allocation5] sm:$0xff] %vm276_vm0, %v949_v0  ;;  %770 = vmatprep.mubr.msk.f32.mxu0 %vm950_vm1, %v949_v0  ;;  %s951_s15 = smov [#allocation6]  }
  0x16   : > { %773 = vmatprep.subr.mxu1 %v949_v0  ;;  %805 = vmatprep.mubr.msk.f32.mxu1 %vm950_vm1, %v949_v0  ;;  %s702_s27 = sshll.u32 %s1033_s26, 7  ;;  %s676_s4 = sshll.u32 %s1033_s26, 3  ;;  %v438_v28 = vand.u32 127, %v437_v27 }
  0x17   : > { %s1043_s30 = scalar_lea.vmem %s1178_s1, %s702_s27  ;;  %s249_s7 = scalar_lea.vmem %s1177_s0, %s676_s4 }
  0x18   : > { %v297_v1 = vld [vmem:[%s1043_s30 + $0x78] sm:$0xff]  ;;  %v296_v2 = vld [vmem:[%s1043_s30 + $0x70] sm:$0xff]  ;;  %v278_v3 = vld [vmem:[%s249_s7] sm:$0xff]  ;;  %s1103_s10 = scalar_lea.vmem %s1179_s2, %s702_s27  ;;  %vm441_vm2 = vcmp.lt.s32.totalorder %v438_v28, 8  ;;  %s875_s4 = sshll.u32 %s951_s15, 4  ;;  %s876_s4 = int_to_ptr.vmem [resolvable:$false] %s875_s4 }
  0x19   : > { %739 = vmatpush3.xpose.msk.msra.mxu0 %vm276_vm0, %v297_v1  ;;  %v295_v4 = vld [vmem:[%s1043_s30 + $0x68] sm:$0xff]  ;;  %v279_v5 = vmul.f32 0.17677669, %v278_v3  ;;  %v294_v6 = vld [vmem:[%s1043_s30 + $0x60] sm:$0xff]  ;;  %v293_v7 = vld [vmem:[%s1043_s30 + $0x58] sm:$0xff]  ;;  %s877_s5 = scalar_lea.vmem %s876_s4, 256  ;;  %p878_p1 = scmp.lt.s32.totalorder %s561_s23, %s876_s4 }
  0x1a   : > { %740 = vmatprep.subr.mxu0 %v949_v0  ;;  %v292_v8 = vld [vmem:[%s1043_s30 + $0x50] sm:$0xff]  ;;  %v291_v9 = vld [vmem:[%s1043_s30 + $0x48] sm:$0xff]  ;;  %v290_v10 = vld [vmem:[%s1043_s30 + $0x40] sm:$0xff] }
  0x1b   : > { %280 = vst.msk [vmem:[#allocation2] sm:$0xff] %vm276_vm0, %v279_v5  ;;  %v289_v11 = vld [vmem:[%s1043_s30 + $0x38] sm:$0xff]  ;;  %v288_v12 = vld [vmem:[%s1043_s30 + $0x30] sm:$0xff]  ;;  %v287_v13 = vld [vmem:[%s1043_s30 + $0x28] sm:$0xff] }
  0x1c   : > { %v286_v14 = vld [vmem:[%s1043_s30 + $0x20] sm:$0xff]  ;;  %v285_v15 = vld [vmem:[%s1043_s30 + $0x18] sm:$0xff]  ;;  %v284_v16 = vld [vmem:[%s1043_s30 + $0x10] sm:$0xff] }
  0x1d   : > { %741 = vmatpush3.xpose.msk.msra.mxu0 %vm276_vm0, %v296_v2  ;;  %v283_v17 = vld [vmem:[%s1043_s30 + $0x8] sm:$0xff]  ;;  %v282_v18 = vld [vmem:[%s1043_s30] sm:$0xff]  ;;  %v313_v20 = vld [vmem:[%s1103_s10 + $0x78] sm:$0xff]  ;;  %s871_s30 = scalar_lea.vmem %s561_s23, 128 }
  0x1e   : > { %742 = vmatprep.subr.mxu0 %v949_v0  ;;  %v312_v21 = vld [vmem:[%s1103_s10 + $0x70] sm:$0xff]  ;;  %774 = vmatpush3.msra.mxu1 %v313_v20  ;;  %v311_v22 = vld [vmem:[%s1103_s10 + $0x68] sm:$0xff]  ;;  %v310_v23 = vld [vmem:[%s1103_s10 + $0x60] sm:$0xff]  ;;  %p872_p12 = scmp.ne.s32.totalorder %s561_s23, %s871_s30  ;;  %p879_p2 = scmp.lt.s32.totalorder %s877_s5, %s871_s30 }
  0x1f   : > { %775 = vmatprep.subr.mxu1 %v949_v0  ;;  %v309_v24 = vld [vmem:[%s1103_s10 + $0x58] sm:$0xff]  ;;  %v308_v25 = vld [vmem:[%s1103_s10 + $0x50] sm:$0xff]  ;;  %v307_v26 = vld [vmem:[%s1103_s10 + $0x48] sm:$0xff] }
  0x20   : > { %776 = vmatpush3.msra.mxu1 %v312_v21  ;;  %v306_v32 = vld [vmem:[%s1103_s10 + $0x40] sm:$0xff]  ;;  %v305_v33 = vld [vmem:[%s1103_s10 + $0x38] sm:$0xff]  ;;  %v304_v34 = vld [vmem:[%s1103_s10 + $0x30] sm:$0xff]  ;;  %p873_p13 = pnand %p872_p12, %p1012_p4  ;;  %p880_p3 = por %p879_p2, %p878_p1 }
  0x21   : > { %743 = vmatpush3.xpose.msk.msra.mxu0 %vm276_vm0, %v295_v4  ;;  %777 = vmatprep.subr.mxu1 %v949_v0  ;;  %v303_v35 = vld [vmem:[%s1103_s10 + $0x28] sm:$0xff]  ;;  %v302_v36 = vld [vmem:[%s1103_s10 + $0x20] sm:$0xff]  ;;  %v301_v37 = vld [vmem:[%s1103_s10 + $0x18] sm:$0xff] }
  0x22   : > { %744 = vmatprep.subr.mxu0 %v949_v0  ;;  %v281_v19 = vld [vmem:[#allocation2] sm:$0xff]  ;;  %778 = vmatpush3.msra.mxu1 %v311_v22  ;;  %v300_v38 = vld [vmem:[%s1103_s10 + $0x10] sm:$0xff]  ;;  %v299_v39 = vld [vmem:[%s1103_s10 + $0x8] sm:$0xff]  ;;  %p874_p0 = pneg %p873_p13 }
  0x23   : > { %779 = vmatprep.subr.mxu1 %v949_v0  ;;  %v298_v40 = vld [vmem:[%s1103_s10] sm:$0xff]  ;;  %v529_v51 = vld [vmem:[#allocation5] sm:$0xff] }
  0x24   : > { %780 = vmatpush3.msra.mxu1 %v310_v23  ;;  %p881_p5 = pnand %p880_p3, %p874_p0 }
  0x25   : > { %745 = vmatpush3.xpose.msk.msra.mxu0 %vm276_vm0, %v294_v6  ;;  %781 = vmatprep.subr.mxu1 %v949_v0 }
  0x26   : > { %746 = vmatprep.subr.mxu0 %v949_v0  ;;  %782 = vmatpush3.msra.mxu1 %v309_v24 }
  0x27   : > { %783 = vmatprep.subr.mxu1 %v949_v0 }
  0x28   : > { %784 = vmatpush3.msra.mxu1 %v308_v25 }
  0x29   : > { %747 = vmatpush3.xpose.msk.msra.mxu0 %vm276_vm0, %v293_v7  ;;  %785 = vmatprep.subr.mxu1 %v949_v0 }
  0x2a   : > { %748 = vmatprep.subr.mxu0 %v949_v0  ;;  %786 = vmatpush3.msra.mxu1 %v307_v26 }
  0x2b   : > { %787 = vmatprep.subr.mxu1 %v949_v0 }
  0x2c   : > { %788 = vmatpush3.msra.mxu1 %v306_v32 }
  0x2d   : > { %749 = vmatpush3.xpose.msk.msra.mxu0 %vm276_vm0, %v292_v8  ;;  %789 = vmatprep.subr.mxu1 %v949_v0 }
  0x2e   : > { %750 = vmatprep.subr.mxu0 %v949_v0  ;;  %790 = vmatpush3.msra.mxu1 %v305_v33 }
  0x2f   : > { %791 = vmatprep.subr.mxu1 %v949_v0 }
  0x30   : > { %792 = vmatpush3.msra.mxu1 %v304_v34 }
  0x31   : > { %751 = vmatpush3.xpose.msk.msra.mxu0 %vm276_vm0, %v291_v9  ;;  %793 = vmatprep.subr.mxu1 %v949_v0 }
  0x32   : > { %752 = vmatprep.subr.mxu0 %v949_v0  ;;  %794 = vmatpush3.msra.mxu1 %v303_v35 }
  0x33   : > { %795 = vmatprep.subr.mxu1 %v949_v0 }
  0x34   : > { %796 = vmatpush3.msra.mxu1 %v302_v36 }
  0x35   : > { %753 = vmatpush3.xpose.msk.msra.mxu0 %vm276_vm0, %v290_v10  ;;  %797 = vmatprep.subr.mxu1 %v949_v0 }
  0x36   : > { %754 = vmatprep.subr.mxu0 %v949_v0  ;;  %798 = vmatpush3.msra.mxu1 %v301_v37 }
  0x37   : > { %799 = vmatprep.subr.mxu1 %v949_v0 }
  0x38   : > { %800 = vmatpush3.msra.mxu1 %v300_v38 }
  0x39   : > { %755 = vmatpush3.xpose.msk.msra.mxu0 %vm276_vm0, %v289_v11  ;;  %801 = vmatprep.subr.mxu1 %v949_v0 }
  0x3a   : > { %756 = vmatprep.subr.mxu0 %v949_v0  ;;  %802 = vmatpush3.msra.mxu1 %v299_v39 }
  0x3b   : > { %803 = vmatprep.subr.mxu1 %v949_v0 }
  0x3c   : > { %804 = vmatpush3.msra.mxu1 %v298_v40 }
  0x3d   : > { %757 = vmatpush3.xpose.msk.msra.mxu0 %vm276_vm0, %v288_v12 }
  0x3e   : > { %758 = vmatprep.subr.mxu0 %v949_v0 }
  0x41   : > { %759 = vmatpush3.xpose.msk.msra.mxu0 %vm276_vm0, %v287_v13 }
  0x42   : > { %760 = vmatprep.subr.mxu0 %v949_v0 }
  0x45   : > { %761 = vmatpush3.xpose.msk.msra.mxu0 %vm276_vm0, %v286_v14 }
  0x46   : > { %762 = vmatprep.subr.mxu0 %v949_v0 }
  0x49   : > { %763 = vmatpush3.xpose.msk.msra.mxu0 %vm276_vm0, %v285_v15 }
  0x4a   : > { %764 = vmatprep.subr.mxu0 %v949_v0 }
  0x4d   : > { %765 = vmatpush3.xpose.msk.msra.mxu0 %vm276_vm0, %v284_v16 }
  0x4e   : > { %766 = vmatprep.subr.mxu0 %v949_v0 }
  0x51   : > { %767 = vmatpush3.xpose.msk.msra.mxu0 %vm276_vm0, %v283_v17 }
  0x52   : > { %768 = vmatprep.subr.mxu0 %v949_v0 }
  0x55   : > { %769 = vmatpush3.xpose.msk.msra.mxu0 %vm276_vm0, %v282_v18 }
  0x58   : > { %771 = vmatmul.mubr.msk.f32.vlgmr.msra.gmra.mxu0 %vm276_vm0, %v281_v19 }
 0x118   : > { %v432_v29 = vpop.f32.mrf.mxu0 }
 0x119   : > { %v442_v30 = vsel %vm441_vm2, %v432_v29, -inf }
 0x11a   : > { %445 = vmax.xlane.f32.xlu0 %v442_v30  ;;  %v772_v31 = vpop.f32.mrf.mxu0 }
 0x1a3   : > { %v446_v41 = vpop.xlane.xlu0 %445 }
 0x1a4   : > { %v451_v42 = vsub.f32 %v442_v30, %v446_v41  ;;  %v448_v45 = vsub.f32 -inf, %v446_v41 }
 0x1a6   : > { %v452_v43 = vmul.f32 1.442695, %v451_v42  ;;  %v449_v46 = vmul.f32 1.442695, %v448_v45 }
 0x1a8   : > { %865 = vpow2.f32 %v452_v43 }
 0x1a9   : > { %867 = vpow2.f32 %v449_v46 }
 0x1b5   : > { %v866_v44 = vpop.eup %865 }
 0x1b6   : > { %455 = vadd.xlane.f32.xlu0 %v866_v44  ;;  %806 = vmatmul.mubr.f32.vlgmr.msra.gmra.mxu1 %v866_v44  ;;  %v868_v47 = vpop.eup %867 }
 0x1b7   : > { %v454_v49 = vmul.f32 0.0, %v868_v47  ;;  %v530_v52 = vmul.f32 %v868_v47, %v529_v51 }
 0x23f   : > { %v456_v48 = vpop.xlane.xlu0 %455 }
 0x240   : > { %v457_v50 = vadd.f32 %v456_v48, %v454_v49 }
 0x242   : > { %869 = vrcp.f32 %v457_v50  ;;  %vm538_vm3 = vcmp.eq.f32.partialorder %v457_v50, 0.0 }
 0x24f   : > { %v870_v56 = vpop.eup %869 }
 0x250   : > { %v541_v57 = vsel %vm538_vm3, 1.0, %v870_v56 }
 0x276   : > { %v525_v53 = vpop.f32.mrf.mxu1 }
 0x277   : > { %v531_v54 = vadd.f32 %v530_v52, %v525_v53 }
 0x278   : > { %v807_v55 = vpop.f32.mrf.mxu1 }
 0x279   : > { %532 = vst.msk [vmem:[#allocation5] sm:$0xff] %vm276_vm0, %v531_v54 }
 0x280   : > { %v542_v58 = vld [vmem:[#allocation5] sm:$0xff] }
 0x281   : > { %v543_v59 = vmul.f32 %v542_v58, %v541_v57 }
 0x283   : > { %544 = vst.msk [vmem:[%s242_s21] sm:$0xff] %vm276_vm0, %v543_v59 }
 0x284   : > { %884 = shalt.err (!%p881_p5)
}
 0x285   : > { %s885_s6 = scalar_lea.hbm %s558_s28, 128  ;;  %s889_s9 = scalar_lea.hbm %s1180_s3, 1024 }
 0x286   : > { %p886_p6 = scmp.ne.s32.totalorder %s558_s28, %s885_s6  ;;  %p890_p10 = scmp.lt.s32.totalorder %s558_s28, %s1180_s3 }
 0x287   : > { %p891_p11 = scmp.lt.s32.totalorder %s889_s9, %s885_s6 }
 0x288   : > { %p887_p7 = pnand %p886_p6, %p1012_p4 }
 0x289   : > { %p892_p12 = por %p891_p11, %p890_p10 }
 0x28a   : > { %p888_p9 = pneg %p887_p7 }
 0x28c   : > { %p893_p13 = pnand %p892_p12, %p888_p9 }
 0x28e   : > { %896 = shalt.err (!%p893_p13)
}
 0x28f   : > { %808 = dma.vmem_to_hbm [thread:$0]  (%p1012_p4), %s561_s23, 128, %s558_s28, %s546_s29  }
 0x290 PF: > { %p814_p0 = scmp.ge.s32.totalorder %s947_s17, 2  ;;  %s572_s18 = sand.u32 1, %s927_s12  }
 0x291   : > { %s573_s19 = scalar_lea.sflag [#allocation7], %s572_s18 }
 0x292   : > { %p811_p1 = pnand %p814_p0, %p1019_p8 }
 0x294   : > { %p812_p2 = pneg %p811_p1 }
 0x296   : > { %922 = dma.done.wait (%p812_p2), %s573_s19, 128  }
 0x297   : > { %924 = vsyncadd (%p812_p2), %s573_s19, 4294967168  ;;  %s16_s17 = sadd.s32 1, %s947_s17   ;;  %s1183_s12 = smov %s931_s13 }
 0x298   : > { %p13_p3 = scmp.ge.s32.totalorder %s16_s17, 10   ;;  %s1184_s13 = smov %s935_s14 }
 0x299   : > { %s1185_s14 = smov %s1025_s25  ;;  %s1186_s15 = smov %s943_s16 }
 0x29a   : > { %s1187_s16 = smov %s1189_s20  ;;  %15 = sbr.rel (!%p13_p3) target bundleno = 4 (0x4), region = 81 }
 0x29f   :  { %578 = vsyncpa [#allocation7], 1 }
 0x2a0   :  { %580 = vsyncpa [#allocation7 + $0x1], 1 }

</bundles_post_ra>
